<compile_context>
chip_gen: v7x
topology: tpu7x:2x2x1
jax: 0.10.0
libtpu: 0.0.40
codegen_flags: <defaults>
</compile_context>

<pallas_src>
import jax
import jax.numpy as jnp
from jax.experimental import pallas as pl
from jax.experimental.pallas import tpu as pltpu

IN_FEATURES = 512
EMBED_DIM = 256


def _round_up(v, m):
    return (v + m - 1) // m * m


def _tensorcores_per_device():
    """2 on v7x (dual TensorCore per device), else 1.  Defensive default: 1."""
    try:
        kind = jax.devices()[0].device_kind.lower()
    except Exception:
        return 1
    return 2 if "v7" in kind else 1


def _choose_tile_m(M, tile_m, n_tc):
    """Pick the M tile: big blocks, balanced across TensorCores, 16-aligned."""
    tile_m = max(16, min(int(tile_m), 4096))  # 4096 cap: v7x has 64 MiB VMEM
    if M <= tile_m:
        if n_tc >= 2 and M > 16:
            # Split small/medium M evenly across the two v7x TensorCores.
            return _round_up(pl.cdiv(M, n_tc), 16)
        # Single-TC chips: one grid step; extra steps are pure overhead.
        return _round_up(M, 16)
    # Large M: equal-sized blocks, block count a multiple of n_tc, so both
    # v7x cores get near-identical work (no 2048-row block + tiny edge block).
    n_blocks = n_tc * pl.cdiv(M, n_tc * tile_m)
    return _round_up(pl.cdiv(M, n_blocks), 16)


def _linear_kernel(x_ref, w_ref, b_ref, o_ref):
    # In-kernel cast of the x tile to the MXU compute dtype (VPU work hidden
    # under the DMA bound); no-op when compute_dtype == x.dtype.
    x = x_ref[...].astype(w_ref.dtype)
    acc = jnp.dot(x, w_ref[...], preferred_element_type=jnp.float32)
    o_ref[...] = (acc + b_ref[...]).astype(o_ref.dtype)


def adjust_video(x, w_t, b, *, tile_m=2048, compute_dtype=jnp.bfloat16,
                 out_dtype=None):
    """y = x @ w_t + b over the last dim of x.

    x   : (..., IN_FEATURES)        -- streamed in its native dtype
    w_t : (IN_FEATURES, EMBED_DIM)  -- PyTorch weight, transposed
    b   : (EMBED_DIM,)
    out_dtype: output dtype; default x.dtype.  Use jnp.bfloat16 to halve
               output HBM bytes when the consumer tolerates it.
    compute_dtype: MXU operand dtype; jnp.float32 gives a numerics opt-out.
    """
    orig_shape = x.shape
    K = orig_shape[-1]
    assert K == w_t.shape[0]
    N = w_t.shape[1]
    out_dtype = jnp.dtype(x.dtype if out_dtype is None else out_dtype)

    x2 = x.reshape(-1, K)            # native dtype; no astype copy of x
    M = x2.shape[0]

    w_tc = w_t.astype(compute_dtype)           # small, grid-resident parameter
    b2 = b.reshape(1, N).astype(jnp.float32)   # bias added in f32

    n_tc = _tensorcores_per_device()
    tm = _choose_tile_m(M, tile_m, n_tc)
    grid = (pl.cdiv(M, tm),)   # edge block handled by Pallas; no pad copy of x

    # Honest byte accounting (x at real HBM dtype, output at out_dtype).
    cost = pl.CostEstimate(
        flops=2 * M * K * N,
        transcendentals=0,
        bytes_accessed=(M * K * x2.dtype.itemsize
                        + K * N * jnp.dtype(compute_dtype).itemsize
                        + N * 4
                        + M * N * out_dtype.itemsize),
    )

    def _call(single_buffer_resident):
        if single_buffer_resident:
            w_spec = pl.BlockSpec((K, N), lambda i: (0, 0),
                                  pipeline_mode=pl.Buffered(1))
            b_spec = pl.BlockSpec((1, N), lambda i: (0, 0),
                                  pipeline_mode=pl.Buffered(1))
        else:
            w_spec = pl.BlockSpec((K, N), lambda i: (0, 0))
            b_spec = pl.BlockSpec((1, N), lambda i: (0, 0))
        return pl.pallas_call(
            _linear_kernel,
            out_shape=jax.ShapeDtypeStruct((M, N), out_dtype),
            grid_spec=pltpu.PrefetchScalarGridSpec(
                num_scalar_prefetch=0,
                grid=grid,
                in_specs=[
                    pl.BlockSpec((tm, K), lambda i: (i, 0)),  # x tile (native dtype)
                    w_spec,                                   # resident weight
                    b_spec,                                   # resident bias
                ],
                out_specs=pl.BlockSpec((tm, N), lambda i: (i, 0)),
            ),
            compiler_params=pltpu.CompilerParams(
                dimension_semantics=("parallel",),
                vmem_limit_bytes=32 * 1024 * 1024,
            ),
            cost_estimate=cost,
        )(x2, w_tc, b2)

    try:
        # Single-buffer the grid-resident weight/bias (constant block index):
        # saves ~256 KiB of redundant double-buffer VMEM.
        out = _call(True)
    except Exception:
        # pipeline_mode / Buffered(1) unsupported on this jax version; the
        # default double-buffered resident operands are still correct.
        out = _call(False)

    return out.reshape(*orig_shape[:-1], N)


if __name__ == "__main__":
    key = jax.random.PRNGKey(0)
    kx, kw, kb = jax.random.split(key, 3)

    # Small input consistent with the module: (batch=2, seq=8, 512).
    x = jax.random.normal(kx, (2, 8, IN_FEATURES), dtype=jnp.float32)

    # Deterministic PyTorch-style init (uniform bound 1/sqrt(fan_in)).
    bound = 1.0 / jnp.sqrt(jnp.float32(IN_FEATURES))
    w = jax.random.uniform(kw, (EMBED_DIM, IN_FEATURES), jnp.float32, -bound, bound)
    b = jax.random.uniform(kb, (EMBED_DIM,), jnp.float32, -bound, bound)
    w_t = w.T  # (IN_FEATURES, EMBED_DIM)

    y = adjust_video(x, w_t, b)
    jax.block_until_ready(y)
    assert y.shape == (2, 8, EMBED_DIM)
    assert y.dtype == x.dtype

    # Tight check against a reference that mimics the kernel's bf16-operand /
    # f32-accumulate arithmetic.
    y_ref_bf16 = (x.astype(jnp.bfloat16).astype(jnp.float32)
                  @ w_t.astype(jnp.bfloat16).astype(jnp.float32)) + b
    assert jnp.allclose(y, y_ref_bf16, atol=1e-3, rtol=1e-3)

    # Looser sanity check against the full-f32 PyTorch-equivalent reference
    # (bf16 MXU operands change results at the ~1e-2 relative level).
    y_ref_f32 = x @ w_t + b
    assert jnp.allclose(y, y_ref_f32, atol=3e-2, rtol=3e-2)

    # Numerics opt-out path (f32 operands) stays close to the f32 reference.
    y_f32 = adjust_video(x, w_t, b, compute_dtype=jnp.float32)
    jax.block_until_ready(y_f32)
    assert jnp.allclose(y_f32, y_ref_f32, atol=1e-2, rtol=1e-2)

    # bf16-output knob: shape/dtype sanity (halves output HBM bytes).
    y_bf16 = adjust_video(x, w_t, b, out_dtype=jnp.bfloat16)
    jax.block_until_ready(y_bf16)
    assert y_bf16.dtype == jnp.bfloat16
    assert y_bf16.shape == (2, 8, EMBED_DIM)

    print("KERNEL_OK")
</pallas_src>

<mosaic_0001>
module attributes {stable_mosaic.version = 11 : i64} {
  func.func @_linear_kernel(%arg0: i32, %arg1: memref<16x512xf32, #tpu.memory_space<vmem>>, %arg2: memref<512x256xbf16, #tpu.memory_space<vmem>>, %arg3: memref<1x256xf32, #tpu.memory_space<vmem>>, %arg4: memref<16x256xf32, #tpu.memory_space<vmem>>) attributes {dimension_semantics = [#tpu.dimension_semantics<parallel>], iteration_bounds = array<i64: 1>, scalar_prefetch = 0 : i64, scratch_operands = 0 : i64, tpu.core_type = #tpu.core_type<tc>, window_params = [{transform_indices = @transform_0, window_bounds = array<i64: 16, 512>}, {pipeline_mode = #tpu.pipeline_mode<synchronous>, transform_indices = @transform_1, window_bounds = array<i64: 512, 256>}, {pipeline_mode = #tpu.pipeline_mode<synchronous>, transform_indices = @transform_2, window_bounds = array<i64: 1, 256>}, {transform_indices = @transform_3, window_bounds = array<i64: 16, 256>}]} {
    %c0 = arith.constant 0 : index
    %c0_0 = arith.constant 0 : index
    %0 = vector.load %arg1[%c0, %c0_0] : memref<16x512xf32, #tpu.memory_space<vmem>>, vector<16x512xf32>
    %1 = arith.truncf %0 : vector<16x512xf32> to vector<16x512xbf16>
    %c0_1 = arith.constant 0 : index
    %c0_2 = arith.constant 0 : index
    %2 = vector.load %arg2[%c0_1, %c0_2] : memref<512x256xbf16, #tpu.memory_space<vmem>>, vector<512x256xbf16>
    %cst = arith.constant dense<0.000000e+00> : vector<16x256xf32>
    %3 = tpu.matmul %1, %2, %cst {dimension_numbers = #tpu.dot_dimension_numbers<[1], [0], [0], [1], [0, 0, 1, 1], [], []>} : vector<16x512xbf16>, vector<512x256xbf16>, vector<16x256xf32> -> vector<16x256xf32>
    %c0_3 = arith.constant 0 : index
    %c0_4 = arith.constant 0 : index
    %4 = vector.load %arg3[%c0_3, %c0_4] : memref<1x256xf32, #tpu.memory_space<vmem>>, vector<1x256xf32>
    %5 = vector.broadcast %4 : vector<1x256xf32> to vector<16x256xf32>
    %6 = arith.addf %3, %5 : vector<16x256xf32>
    %c0_5 = arith.constant 0 : index
    %c0_6 = arith.constant 0 : index
    %7 = vector.load %arg4[%c0_5, %c0_6] : memref<16x256xf32, #tpu.memory_space<vmem>>, vector<16x256xf32>
    tpu.vector_store %arg4[%c0_5, %c0_6], %6 {strides = array<i32>} : memref<16x256xf32, #tpu.memory_space<vmem>>, vector<16x256xf32>,
    return
  }
  func.func @transform_0(%arg0: i32) -> (i32, i32) {
    %c0_i32 = arith.constant 0 : i32
    %c0_i32_0 = arith.constant 0 : i32
    return %arg0, %c0_i32 : i32, i32
  }
  func.func @transform_1(%arg0: i32) -> (i32, i32) {
    %c0_i32 = arith.constant 0 : i32
    %c0_i32_0 = arith.constant 0 : i32
    %c0_i32_1 = arith.constant 0 : i32
    return %c0_i32, %c0_i32_0 : i32, i32
  }
  func.func @transform_2(%arg0: i32) -> (i32, i32) {
    %c0_i32 = arith.constant 0 : i32
    %c0_i32_0 = arith.constant 0 : i32
    %c0_i32_1 = arith.constant 0 : i32
    return %c0_i32, %c0_i32_0 : i32, i32
  }
  func.func @transform_3(%arg0: i32) -> (i32, i32) {
    %c0_i32 = arith.constant 0 : i32
    %c0_i32_0 = arith.constant 0 : i32
    return %arg0, %c0_i32 : i32, i32
  }
}

module attributes {stable_mosaic.version = 11 : i64} {
  func.func @_linear_kernel(%arg0: i32, %arg1: memref<16x512xf32, #tpu.memory_space<vmem>>, %arg2: memref<512x256xbf16, #tpu.memory_space<vmem>>, %arg3: memref<1x256xf32, #tpu.memory_space<vmem>>, %arg4: memref<16x256xf32, #tpu.memory_space<vmem>>) attributes {dimension_semantics = [#tpu.dimension_semantics<parallel>], iteration_bounds = array<i64: 1>, scalar_prefetch = 0 : i64, scratch_operands = 0 : i64, tpu.core_type = #tpu.core_type<tc>, window_params = [{transform_indices = @transform_0, window_bounds = array<i64: 16, 512>}, {pipeline_mode = #tpu.pipeline_mode<synchronous>, transform_indices = @transform_1, window_bounds = array<i64: 512, 256>}, {pipeline_mode = #tpu.pipeline_mode<synchronous>, transform_indices = @transform_2, window_bounds = array<i64: 1, 256>}, {transform_indices = @transform_3, window_bounds = array<i64: 16, 256>}]} {
    %c0 = arith.constant 0 : index
    %c0_0 = arith.constant 0 : index
    %0 = vector.load %arg1[%c0, %c0_0] : memref<16x512xf32, #tpu.memory_space<vmem>>, vector<16x512xf32>
    %1 = arith.truncf %0 : vector<16x512xf32> to vector<16x512xbf16>
    %c0_1 = arith.constant 0 : index
    %c0_2 = arith.constant 0 : index
    %2 = vector.load %arg2[%c0_1, %c0_2] : memref<512x256xbf16, #tpu.memory_space<vmem>>, vector<512x256xbf16>
    %cst = arith.constant dense<0.000000e+00> : vector<16x256xf32>
    %3 = tpu.matmul %1, %2, %cst {dimension_numbers = #tpu.dot_dimension_numbers<[1], [0], [0], [1], [0, 0, 1, 1], [], []>} : vector<16x512xbf16>, vector<512x256xbf16>, vector<16x256xf32> -> vector<16x256xf32>
    %c0_3 = arith.constant 0 : index
    %c0_4 = arith.constant 0 : index
    %4 = vector.load %arg3[%c0_3, %c0_4] : memref<1x256xf32, #tpu.memory_space<vmem>>, vector<1x256xf32>
    %5 = vector.broadcast %4 : vector<1x256xf32> to vector<16x256xf32>
    %6 = arith.addf %3, %5 : vector<16x256xf32>
    %c0_5 = arith.constant 0 : index
    %c0_6 = arith.constant 0 : index
    %7 = vector.load %arg4[%c0_5, %c0_6] : memref<16x256xf32, #tpu.memory_space<vmem>>, vector<16x256xf32>
    tpu.vector_store %arg4[%c0_5, %c0_6], %6 {strides = array<i32>} : memref<16x256xf32, #tpu.memory_space<vmem>>, vector<16x256xf32>,
    return
  }
  func.func @transform_0(%arg0: i32) -> (i32, i32) {
    %c0_i32 = arith.constant 0 : i32
    %c0_i32_0 = arith.constant 0 : i32
    return %arg0, %c0_i32 : i32, i32
  }
  func.func @transform_1(%arg0: i32) -> (i32, i32) {
    %c0_i32 = arith.constant 0 : i32
    %c0_i32_0 = arith.constant 0 : i32
    %c0_i32_1 = arith.constant 0 : i32
    return %c0_i32, %c0_i32_0 : i32, i32
  }
  func.func @transform_2(%arg0: i32) -> (i32, i32) {
    %c0_i32 = arith.constant 0 : i32
    %c0_i32_0 = arith.constant 0 : i32
    %c0_i32_1 = arith.constant 0 : i32
    return %c0_i32, %c0_i32_0 : i32, i32
  }
  func.func @transform_3(%arg0: i32) -> (i32, i32) {
    %c0_i32 = arith.constant 0 : i32
    %c0_i32_0 = arith.constant 0 : i32
    return %arg0, %c0_i32 : i32, i32
  }
}

</mosaic_0001>

<bundles_post_ra>
// kernel: tpu_custom_call.1
= control target key start
LH: loop header
LB: loop body
LE: loop exit
PB: predicated region body
PF: predicated region fallthrough
CT: control target
= control target key end

     0   :  { %8 = vsyncpa [#allocation3], 0  ;;  %s876_s0 = inlined_call_operand.hbm [shape: f32[16,512], index: 0, kind: input, shape index: {}]   ;;  %s877_s1 = inlined_call_operand.hbm [shape: bf16[512,256], index: 1, kind: input, shape index: {}]   ;;  %s878_s2 = inlined_call_operand.vmem [shape: f32[1,256], index: 2, kind: input, shape index: {}]   ;;  %s879_s3 = inlined_call_operand.hbm [shape: f32[16,256], index: 3, kind: output, shape index: {}]  }
   0x1   :  { %9 = vsyncpa [#allocation6], 0 }
   0x2   :  { %10 = vsyncpa [#allocation4], 0  ;;  %s808_s12 = smov [#allocation2]   ;;  %s736_s16 = scalar_lea.hbm %s876_s0, 1024 }
   0x3   :  { %s16_s13 = sshll.u32 %s808_s12, 4  ;;  %p737_p0 = scmp.ne.s32.totalorder %s876_s0, %s736_s16  ;;  %s17_s13 = int_to_ptr.vmem [resolvable:$true] %s16_s13 }
   0x4   :  { %p740_p1 = scmp.lt.u32.totalorder %s736_s16, %s876_s0 }
   0x6   :  { %p742_p2 = pnand %p740_p1, %p737_p0 }
   0x8   :  { %745 = shalt.err (!%p742_p2)
}
   0x9   :  { %s746_s21 = scalar_lea.vmem %s17_s13, 1024  ;;  %p751_p4 = scmp.lt.s32.totalorder %s17_s13, %s17_s13 }
   0xa   :  { %p747_p3 = scmp.ne.s32.totalorder %s17_s13, %s746_s21  ;;  %p752_p5 = scmp.lt.s32.totalorder %s746_s21, %s746_s21 }
   0xc   :  { %p753_p6 = por %p752_p5, %p751_p4 }
   0xe   :  { %p754_p7 = pnand %p753_p6, %p747_p3 }
  0x10   :  { %757 = shalt.err (!%p754_p7)
}
  0x11   :  { %s809_s22 = smov 512   ;;  %s810_s23 = smov 32  }
  0x12   :  { %22 = dma.hbm_to_vmem [thread:$0]  %s876_s0, 1024, %s17_s13, [#allocation3], %s809_s22, %s809_s22, %s810_s23  }
  0x13   :  { %s811_s26 = smov [#allocation5]   ;;  %s758_s30 = scalar_lea.hbm %s877_s1, 8192 }
  0x14   :  { %s28_s27 = sshll.u32 %s811_s26, 4  ;;  %p759_p8 = scmp.ne.s32.totalorder %s877_s1, %s758_s30  ;;  %s29_s27 = int_to_ptr.vmem [resolvable:$true] %s28_s27 }
  0x15   :  { %p762_p9 = scmp.lt.u32.totalorder %s758_s30, %s877_s1 }
  0x17   :  { %p764_p10 = pnand %p762_p9, %p759_p8 }
  0x19   :  { %767 = shalt.err (!%p764_p10)
}
  0x1a   :  { %s768_s8 = scalar_lea.vmem %s29_s27, 8192  ;;  %p773_p12 = scmp.lt.s32.totalorder %s29_s27, %s29_s27 }
  0x1b   :  { %p769_p11 = scmp.ne.s32.totalorder %s29_s27, %s768_s8  ;;  %p774_p13 = scmp.lt.s32.totalorder %s768_s8, %s768_s8 }
  0x1d   :  { %p775_p0 = por %p774_p13, %p773_p12 }
  0x1f   :  { %p776_p1 = pnand %p775_p0, %p769_p11 }
  0x21   :  { %779 = shalt.err (!%p776_p1)
}
  0x22   :  { %s812_s0 = smov 128   ;;  %s813_s9 = smov 8  }
  0x23   :  { %34 = dma.hbm_to_vmem [thread:$0]  %s877_s1, 8192, %s29_s27, [#allocation6], %s812_s0, %s812_s0, %s813_s9  }
  0x24   :  { %802 = dma.done.wait [#allocation3], 1024  }
  0x25   :  { %803 = vsyncadd [#allocation3], 4294966272 }
  0x26   :  { %804 = dma.done.wait [#allocation6], 8192  }
  0x27   :  { %805 = vsyncadd [#allocation6], 4294959104  ;;  %v640_v0 = vld [vmem:[#allocation5 + $0x4] ss:$8 sps:$4 sm:$0xff]   ;;  %v644_v2 = vld [vmem:[#allocation5] ss:$8 sps:$4 sm:$0xff]  }
  0x28   :  { %v642_v1 = vld [vmem:[#allocation5 + $0x104] ss:$8 sps:$4 sm:$0xff]   ;;  %451 = vmatprep.subr.bf16.mxu1 %v640_v0  ;;  %v645_v3 = vld [vmem:[#allocation5 + $0x100] ss:$8 sps:$4 sm:$0xff]   ;;  %v646_v4 = vld [vmem:[#allocation5 + $0x14] ss:$8 sps:$4 sm:$0xff]  }
  0x29   :  { %494 = vmatprep.subr.bf16.mxu0 %v642_v1  ;;  %452 = vmatpush1.bf16.msra.mxu1 %v644_v2  ;;  %v648_v5 = vld [vmem:[#allocation5 + $0x114] ss:$8 sps:$4 sm:$0xff]   ;;  %v650_v6 = vld [vmem:[#allocation5 + $0x10] ss:$8 sps:$4 sm:$0xff]   ;;  %v652_v8 = vld [vmem:[#allocation5 + $0x24] ss:$8 sps:$4 sm:$0xff]  }
  0x2a   :  { %495 = vmatpush1.bf16.msra.mxu0 %v645_v3  ;;  %453 = vmatprep.subr.bf16.mxu1 %v646_v4  ;;  %v651_v7 = vld [vmem:[#allocation5 + $0x110] ss:$8 sps:$4 sm:$0xff]   ;;  %v654_v9 = vld [vmem:[#allocation5 + $0x124] ss:$8 sps:$4 sm:$0xff]   ;;  %v656_v10 = vld [vmem:[#allocation5 + $0x20] ss:$8 sps:$4 sm:$0xff]  }
  0x2b   :  { %496 = vmatprep.subr.bf16.mxu0 %v648_v5  ;;  %v657_v11 = vld [vmem:[#allocation5 + $0x120] ss:$8 sps:$4 sm:$0xff]   ;;  %v658_v12 = vld [vmem:[#allocation5 + $0x34] ss:$8 sps:$4 sm:$0xff]   ;;  %v662_v14 = vld [vmem:[#allocation5 + $0x30] ss:$8 sps:$4 sm:$0xff]  }
  0x2c   :  { %v660_v13 = vld [vmem:[#allocation5 + $0x134] ss:$8 sps:$4 sm:$0xff]   ;;  %v663_v15 = vld [vmem:[#allocation5 + $0x130] ss:$8 sps:$4 sm:$0xff]   ;;  %v664_v16 = vld [vmem:[#allocation5 + $0x44] ss:$8 sps:$4 sm:$0xff]  }
  0x2d   :  { %454 = vmatpush1.bf16.msra.mxu1 %v650_v6  ;;  %v666_v17 = vld [vmem:[#allocation5 + $0x144] ss:$8 sps:$4 sm:$0xff]   ;;  %v668_v18 = vld [vmem:[#allocation5 + $0x40] ss:$8 sps:$4 sm:$0xff]   ;;  %v670_v20 = vld [vmem:[#allocation5 + $0x54] ss:$8 sps:$4 sm:$0xff]  }
  0x2e   :  { %497 = vmatpush1.bf16.msra.mxu0 %v651_v7  ;;  %455 = vmatprep.subr.bf16.mxu1 %v652_v8  ;;  %v669_v19 = vld [vmem:[#allocation5 + $0x140] ss:$8 sps:$4 sm:$0xff]   ;;  %v672_v21 = vld [vmem:[#allocation5 + $0x154] ss:$8 sps:$4 sm:$0xff]   ;;  %v674_v22 = vld [vmem:[#allocation5 + $0x50] ss:$8 sps:$4 sm:$0xff]  }
  0x2f   :  { %498 = vmatprep.subr.bf16.mxu0 %v654_v9  ;;  %v675_v23 = vld [vmem:[#allocation5 + $0x150] ss:$8 sps:$4 sm:$0xff]   ;;  %v676_v24 = vld [vmem:[#allocation5 + $0x64] ss:$8 sps:$4 sm:$0xff]   ;;  %v680_v26 = vld [vmem:[#allocation5 + $0x60] ss:$8 sps:$4 sm:$0xff]  }
  0x30   :  { %v678_v25 = vld [vmem:[#allocation5 + $0x164] ss:$8 sps:$4 sm:$0xff]   ;;  %v681_v27 = vld [vmem:[#allocation5 + $0x160] ss:$8 sps:$4 sm:$0xff]   ;;  %v682_v28 = vld [vmem:[#allocation5 + $0x74] ss:$8 sps:$4 sm:$0xff]  }
  0x31   :  { %456 = vmatpush1.bf16.msra.mxu1 %v656_v10  ;;  %v684_v29 = vld [vmem:[#allocation5 + $0x174] ss:$8 sps:$4 sm:$0xff]   ;;  %v686_v30 = vld [vmem:[#allocation5 + $0x70] ss:$8 sps:$4 sm:$0xff]   ;;  %v688_v32 = vld [vmem:[#allocation5 + $0x84] ss:$8 sps:$4 sm:$0xff]  }
  0x32   :  { %499 = vmatpush1.bf16.msra.mxu0 %v657_v11  ;;  %457 = vmatprep.subr.bf16.mxu1 %v658_v12  ;;  %v687_v31 = vld [vmem:[#allocation5 + $0x170] ss:$8 sps:$4 sm:$0xff]   ;;  %v690_v33 = vld [vmem:[#allocation5 + $0x184] ss:$8 sps:$4 sm:$0xff]   ;;  %v692_v34 = vld [vmem:[#allocation5 + $0x80] ss:$8 sps:$4 sm:$0xff]   ;;  %v121_v12 = vlaneseq }
  0x33   :  { %500 = vmatprep.subr.bf16.mxu0 %v660_v13  ;;  %v693_v35 = vld [vmem:[#allocation5 + $0x180] ss:$8 sps:$4 sm:$0xff]   ;;  %v694_v36 = vld [vmem:[#allocation5 + $0x94] ss:$8 sps:$4 sm:$0xff]   ;;  %v698_v38 = vld [vmem:[#allocation5 + $0x90] ss:$8 sps:$4 sm:$0xff]  }
  0x34   :  { %v696_v37 = vld [vmem:[#allocation5 + $0x194] ss:$8 sps:$4 sm:$0xff]   ;;  %v699_v39 = vld [vmem:[#allocation5 + $0x190] ss:$8 sps:$4 sm:$0xff]   ;;  %v700_v40 = vld [vmem:[#allocation5 + $0xa4] ss:$8 sps:$4 sm:$0xff]  }
  0x35   :  { %458 = vmatpush1.bf16.msra.mxu1 %v662_v14  ;;  %v702_v41 = vld [vmem:[#allocation5 + $0x1a4] ss:$8 sps:$4 sm:$0xff]   ;;  %v704_v42 = vld [vmem:[#allocation5 + $0xa0] ss:$8 sps:$4 sm:$0xff]   ;;  %v706_v44 = vld [vmem:[#allocation5 + $0xb4] ss:$8 sps:$4 sm:$0xff]  }
  0x36   :  { %501 = vmatpush1.bf16.msra.mxu0 %v663_v15  ;;  %459 = vmatprep.subr.bf16.mxu1 %v664_v16  ;;  %v705_v43 = vld [vmem:[#allocation5 + $0x1a0] ss:$8 sps:$4 sm:$0xff]   ;;  %v708_v45 = vld [vmem:[#allocation5 + $0x1b4] ss:$8 sps:$4 sm:$0xff]   ;;  %v710_v50 = vld [vmem:[#allocation5 + $0xb0] ss:$8 sps:$4 sm:$0xff]  }
  0x37   :  { %502 = vmatprep.subr.bf16.mxu0 %v666_v17  ;;  %v44_v46 = vld [vmem:[#allocation2 + $0x8] sm:$0xff]  ;;  %v46_v48 = vld [vmem:[#allocation2 + $0x18] sm:$0xff]  ;;  %v43_v6 = vld [vmem:[#allocation2] sm:$0xff]  ;;  %v122_v13 = vshrl.u32 %v121_v12, 7  ;;  %s814_s13 = smov [#allocation7]  }
  0x38   :  { %v48_v47 = vld [vmem:[#allocation2 + $0x28] sm:$0xff]  ;;  %v50_v49 = vld [vmem:[#allocation2 + $0x38] sm:$0xff]  ;;  %v47_v7 = vld [vmem:[#allocation2 + $0x20] sm:$0xff]  ;;  %s546_s14 = sshll.u32 %s814_s13, 4  ;;  %s547_s14 = int_to_ptr.vmem [resolvable:$true] %s546_s14 }
  0x39   :  { %460 = vmatpush1.bf16.msra.mxu1 %v668_v18  ;;  %v711_v51 = vld [vmem:[#allocation5 + $0x1b0] ss:$8 sps:$4 sm:$0xff]   ;;  %v52_v52 = vpack.c.bf16 %v48_v47, %v44_v46  ;;  %v54_v53 = vpack.c.bf16 %v50_v49, %v46_v48  ;;  %v712_v54 = vld [vmem:[#allocation5 + $0xc4] ss:$8 sps:$4 sm:$0xff]   ;;  %v716_v56 = vld [vmem:[#allocation5 + $0xc0] ss:$8 sps:$4 sm:$0xff]   ;;  %v51_v10 = vpack.c.bf16 %v47_v7, %v43_v6  ;;  %p785_p3 = scmp.lt.s32.totalorder %s547_s14, %s547_s14 }
  0x3a   :  { %503 = vmatpush1.bf16.msra.mxu0 %v669_v19  ;;  %461 = vmatprep.subr.bf16.mxu1 %v670_v20  ;;  %v714_v55 = vld [vmem:[#allocation5 + $0x1c4] ss:$8 sps:$4 sm:$0xff]   ;;  %v717_v57 = vld [vmem:[#allocation5 + $0x1c0] ss:$8 sps:$4 sm:$0xff]   ;;  %v718_v58 = vld [vmem:[#allocation5 + $0xd4] ss:$8 sps:$4 sm:$0xff]  }
  0x3b   :  { %504 = vmatprep.subr.bf16.mxu0 %v672_v21  ;;  %483 = vmatprep.mubr.bf16.mxu1 %v52_v52  ;;  %v720_v59 = vld [vmem:[#allocation5 + $0x1d4] ss:$8 sps:$4 sm:$0xff]   ;;  %v722_v60 = vld [vmem:[#allocation5 + $0xd0] ss:$8 sps:$4 sm:$0xff]   ;;  %v724_v62 = vld [vmem:[#allocation5 + $0xe4] ss:$8 sps:$4 sm:$0xff]  }
  0x3c   :  { %526 = vmatprep.mubr.bf16.mxu0 %v54_v53  ;;  %v723_v61 = vld [vmem:[#allocation5 + $0x1d0] ss:$8 sps:$4 sm:$0xff]   ;;  %v726_v63 = vld [vmem:[#allocation5 + $0x1e4] ss:$8 sps:$4 sm:$0xff]   ;;  %v728_v0 = vld [vmem:[#allocation5 + $0xe0] ss:$8 sps:$4 sm:$0xff]  }
  0x3d   :  { %462 = vmatpush1.bf16.msra.mxu1 %v674_v22  ;;  %v729_v1 = vld [vmem:[#allocation5 + $0x1e0] ss:$8 sps:$4 sm:$0xff]   ;;  %v730_v2 = vld [vmem:[#allocation5 + $0xf4] ss:$8 sps:$4 sm:$0xff]   ;;  %v734_v4 = vld [vmem:[#allocation5 + $0xf0] ss:$8 sps:$4 sm:$0xff]  }
  0x3e   :  { %505 = vmatpush1.bf16.msra.mxu0 %v675_v23  ;;  %463 = vmatprep.subr.bf16.mxu1 %v676_v24  ;;  %v732_v3 = vld [vmem:[#allocation5 + $0x1f4] ss:$8 sps:$4 sm:$0xff]   ;;  %v735_v5 = vld [vmem:[#allocation5 + $0x1f0] ss:$8 sps:$4 sm:$0xff]   ;;  %v123_v14 = vsub.s32 0, %v122_v13  ;;  %v127_v16 = vsub.s32 1, %v122_v13 }
  0x3f   :  { %506 = vmatprep.subr.bf16.mxu0 %v678_v25  ;;  %v45_v8 = vld [vmem:[#allocation2 + $0x10] sm:$0xff]  ;;  %v119_v15 = vld [vmem:[%s878_s2] sm:$0x3]  ;;  %s780_s2 = scalar_lea.vmem %s547_s14, 512 }
  0x40   :  { %v49_v9 = vld [vmem:[#allocation2 + $0x30] sm:$0xff]  ;;  %v124_v17 = vrot.slane %v119_v15, %v123_v14  ;;  %v128_v18 = vrot.slane %v119_v15, %v127_v16  ;;  %p781_p2 = scmp.ne.s32.totalorder %s547_s14, %s780_s2  ;;  %p786_p4 = scmp.lt.s32.totalorder %s780_s2, %s780_s2 }
  0x41   :  { %464 = vmatpush1.bf16.msra.mxu1 %v680_v26  ;;  %v53_v11 = vpack.c.bf16 %v49_v9, %v45_v8 }
  0x42   :  { %507 = vmatpush1.bf16.msra.mxu0 %v681_v27  ;;  %465 = vmatprep.subr.bf16.mxu1 %v682_v28  ;;  %p787_p5 = por %p786_p4, %p785_p3 }
  0x43   :  { %508 = vmatprep.subr.bf16.mxu0 %v684_v29 }
  0x44   :  { %p788_p6 = pnand %p787_p5, %p781_p2 }
  0x45   :  { %466 = vmatpush1.bf16.msra.mxu1 %v686_v30 }
  0x46   :  { %509 = vmatpush1.bf16.msra.mxu0 %v687_v31  ;;  %467 = vmatprep.subr.bf16.mxu1 %v688_v32 }
  0x47   :  { %510 = vmatprep.subr.bf16.mxu0 %v690_v33 }
  0x49   :  { %468 = vmatpush1.bf16.msra.mxu1 %v692_v34 }
  0x4a   :  { %511 = vmatpush1.bf16.msra.mxu0 %v693_v35  ;;  %469 = vmatprep.subr.bf16.mxu1 %v694_v36 }
  0x4b   :  { %512 = vmatprep.subr.bf16.mxu0 %v696_v37 }
  0x4d   :  { %470 = vmatpush1.bf16.msra.mxu1 %v698_v38 }
  0x4e   :  { %513 = vmatpush1.bf16.msra.mxu0 %v699_v39  ;;  %471 = vmatprep.subr.bf16.mxu1 %v700_v40 }
  0x4f   :  { %514 = vmatprep.subr.bf16.mxu0 %v702_v41 }
  0x51   :  { %472 = vmatpush1.bf16.msra.mxu1 %v704_v42 }
  0x52   :  { %515 = vmatpush1.bf16.msra.mxu0 %v705_v43  ;;  %473 = vmatprep.subr.bf16.mxu1 %v706_v44 }
  0x53   :  { %516 = vmatprep.subr.bf16.mxu0 %v708_v45 }
  0x55   :  { %474 = vmatpush1.bf16.msra.mxu1 %v710_v50 }
  0x56   :  { %517 = vmatpush1.bf16.msra.mxu0 %v711_v51  ;;  %475 = vmatprep.subr.bf16.mxu1 %v712_v54 }
  0x57   :  { %518 = vmatprep.subr.bf16.mxu0 %v714_v55 }
  0x59   :  { %476 = vmatpush1.bf16.msra.mxu1 %v716_v56 }
  0x5a   :  { %519 = vmatpush1.bf16.msra.mxu0 %v717_v57  ;;  %477 = vmatprep.subr.bf16.mxu1 %v718_v58 }
  0x5b   :  { %520 = vmatprep.subr.bf16.mxu0 %v720_v59 }
  0x5d   :  { %478 = vmatpush1.bf16.msra.mxu1 %v722_v60 }
  0x5e   :  { %521 = vmatpush1.bf16.msra.mxu0 %v723_v61  ;;  %479 = vmatprep.subr.bf16.mxu1 %v724_v62 }
  0x5f   :  { %522 = vmatprep.subr.bf16.mxu0 %v726_v63 }
  0x61   :  { %480 = vmatpush1.bf16.msra.mxu1 %v728_v0 }
  0x62   :  { %523 = vmatpush1.bf16.msra.mxu0 %v729_v1  ;;  %481 = vmatprep.subr.bf16.mxu1 %v730_v2 }
  0x63   :  { %524 = vmatprep.subr.bf16.mxu0 %v732_v3 }
  0x65   :  { %482 = vmatpush1.bf16.msra.mxu1 %v734_v4 }
  0x66   :  { %525 = vmatpush1.bf16.msra.mxu0 %v735_v5 }
  0x68   :  { %484 = vmatmul.mubr.bf16.vlgmr.msra.gmra.mrb[0].mxu1 %v51_v10 }
  0x69   :  { %527 = vmatmul.mubr.bf16.vlgmr.msra.gmra.mrb[0].mxu0 %v53_v11 }
 0x13b   :  { %v485_v19 = vpop.f32.mrb[0].mxu1 }
 0x13c   :  { %v528_v20 = vpop.f32.mrb[0].mxu0  ;;  %v486_v21 = vadd.f32 %v485_v19, %v124_v17  ;;  %v487_v22 = vpop.f32.mrb[1].mxu1 }
 0x13d   :  { %v530_v23 = vpop.f32.mrb[1].mxu0  ;;  %v488_v24 = vadd.f32 %v487_v22, %v128_v18  ;;  %v489_v25 = vpop.f32.mrb[2].mxu1 }
 0x13e   :  { %v532_v26 = vpop.f32.mrb[2].mxu0  ;;  %v529_v27 = vadd.f32 %v528_v20, %v486_v21  ;;  %v490_v28 = vadd.f32 %v489_v25, %v124_v17  ;;  %v491_v29 = vpop.f32.mrb[3].mxu1 }
 0x13f   :  { %v534_v30 = vpop.f32.mrb[3].mxu0  ;;  %v531_v31 = vadd.f32 %v530_v23, %v488_v24  ;;  %v492_v32 = vadd.f32 %v491_v29, %v128_v18 }
 0x140   :  { %537 = vst [vmem:[#allocation7] sm:$0xff] %v529_v27  ;;  %v533_v33 = vadd.f32 %v532_v26, %v490_v28 }
 0x141   :  { %538 = vst [vmem:[#allocation7 + $0x8] sm:$0xff] %v531_v31  ;;  %v535_v34 = vadd.f32 %v534_v30, %v492_v32 }
 0x142   :  { %539 = vst [vmem:[#allocation7 + $0x10] sm:$0xff] %v533_v33 }
 0x143   :  { %540 = vst [vmem:[#allocation7 + $0x18] sm:$0xff] %v535_v34 }
 0x144   :  { %791 = shalt.err (!%p788_p6)
}
 0x145   :  { %s792_s17 = scalar_lea.hbm %s879_s3, 512 }
 0x146   :  { %p793_p7 = scmp.ne.s32.totalorder %s879_s3, %s792_s17  ;;  %p796_p8 = scmp.lt.u32.totalorder %s792_s17, %s879_s3 }
 0x148   :  { %p798_p9 = pnand %p796_p8, %p793_p7 }
 0x14a   :  { %801 = shalt.err (!%p798_p9)
}
 0x14b   :  { %s815_s22 = smov 256   ;;  %s816_s23 = smov 16  }
 0x14c   :  { %552 = dma.vmem_to_hbm [thread:$0]  %s547_s14, 512, %s879_s3, [#allocation4], %s815_s22, %s815_s22, %s816_s23  }
 0x14d   :  { %806 = dma.done.wait [#allocation4], 512  }
 0x14e   :  { %807 = vsyncadd [#allocation4], 4294966784 }
 0x14f   :  { %556 = vsyncpa [#allocation3], 1 }
 0x150   :  { %557 = vsyncpa [#allocation6], 1 }
 0x151   :  { %558 = vsyncpa [#allocation4], 1 }

// kernel: tpu_custom_call.1
= control target key start
LH: loop header
LB: loop body
LE: loop exit
PB: predicated region body
PF: predicated region fallthrough
CT: control target
= control target key end

     0   :  { %8 = vsyncpa [#allocation3], 0  ;;  %s876_s0 = inlined_call_operand.hbm [shape: f32[16,512], index: 0, kind: input, shape index: {}]   ;;  %s877_s1 = inlined_call_operand.hbm [shape: bf16[512,256], index: 1, kind: input, shape index: {}]   ;;  %s878_s2 = inlined_call_operand.vmem [shape: f32[1,256], index: 2, kind: input, shape index: {}]   ;;  %s879_s3 = inlined_call_operand.hbm [shape: f32[16,256], index: 3, kind: output, shape index: {}]  }
   0x1   :  { %9 = vsyncpa [#allocation6], 0 }
   0x2   :  { %10 = vsyncpa [#allocation4], 0  ;;  %s808_s12 = smov [#allocation2]   ;;  %s736_s16 = scalar_lea.hbm %s876_s0, 1024 }
   0x3   :  { %s16_s13 = sshll.u32 %s808_s12, 4  ;;  %p737_p0 = scmp.ne.s32.totalorder %s876_s0, %s736_s16  ;;  %s17_s13 = int_to_ptr.vmem [resolvable:$true] %s16_s13 }
   0x4   :  { %p740_p1 = scmp.lt.u32.totalorder %s736_s16, %s876_s0 }
   0x6   :  { %p742_p2 = pnand %p740_p1, %p737_p0 }
   0x8   :  { %745 = shalt.err (!%p742_p2)
}
   0x9   :  { %s746_s21 = scalar_lea.vmem %s17_s13, 1024  ;;  %p751_p4 = scmp.lt.s32.totalorder %s17_s13, %s17_s13 }
   0xa   :  { %p747_p3 = scmp.ne.s32.totalorder %s17_s13, %s746_s21  ;;  %p752_p5 = scmp.lt.s32.totalorder %s746_s21, %s746_s21 }
   0xc   :  { %p753_p6 = por %p752_p5, %p751_p4 }
   0xe   :  { %p754_p7 = pnand %p753_p6, %p747_p3 }
  0x10   :  { %757 = shalt.err (!%p754_p7)
}
  0x11   :  { %s809_s22 = smov 512   ;;  %s810_s23 = smov 32  }
  0x12   :  { %22 = dma.hbm_to_vmem [thread:$0]  %s876_s0, 1024, %s17_s13, [#allocation3], %s809_s22, %s809_s22, %s810_s23  }
  0x13   :  { %s811_s26 = smov [#allocation5]   ;;  %s758_s30 = scalar_lea.hbm %s877_s1, 8192 }
  0x14   :  { %s28_s27 = sshll.u32 %s811_s26, 4  ;;  %p759_p8 = scmp.ne.s32.totalorder %s877_s1, %s758_s30  ;;  %s29_s27 = int_to_ptr.vmem [resolvable:$true] %s28_s27 }
  0x15   :  { %p762_p9 = scmp.lt.u32.totalorder %s758_s30, %s877_s1 }
  0x17   :  { %p764_p10 = pnand %p762_p9, %p759_p8 }
  0x19   :  { %767 = shalt.err (!%p764_p10)
}
  0x1a   :  { %s768_s8 = scalar_lea.vmem %s29_s27, 8192  ;;  %p773_p12 = scmp.lt.s32.totalorder %s29_s27, %s29_s27 }
  0x1b   :  { %p769_p11 = scmp.ne.s32.totalorder %s29_s27, %s768_s8  ;;  %p774_p13 = scmp.lt.s32.totalorder %s768_s8, %s768_s8 }
  0x1d   :  { %p775_p0 = por %p774_p13, %p773_p12 }
  0x1f   :  { %p776_p1 = pnand %p775_p0, %p769_p11 }
  0x21   :  { %779 = shalt.err (!%p776_p1)
}
  0x22   :  { %s812_s0 = smov 128   ;;  %s813_s9 = smov 8  }
  0x23   :  { %34 = dma.hbm_to_vmem [thread:$0]  %s877_s1, 8192, %s29_s27, [#allocation6], %s812_s0, %s812_s0, %s813_s9  }
  0x24   :  { %802 = dma.done.wait [#allocation3], 1024  }
  0x25   :  { %803 = vsyncadd [#allocation3], 4294966272 }
  0x26   :  { %804 = dma.done.wait [#allocation6], 8192  }
  0x27   :  { %805 = vsyncadd [#allocation6], 4294959104  ;;  %v640_v0 = vld [vmem:[#allocation5 + $0x4] ss:$8 sps:$4 sm:$0xff]   ;;  %v644_v2 = vld [vmem:[#allocation5] ss:$8 sps:$4 sm:$0xff]  }
  0x28   :  { %v642_v1 = vld [vmem:[#allocation5 + $0x104] ss:$8 sps:$4 sm:$0xff]   ;;  %451 = vmatprep.subr.bf16.mxu1 %v640_v0  ;;  %v645_v3 = vld [vmem:[#allocation5 + $0x100] ss:$8 sps:$4 sm:$0xff]   ;;  %v646_v4 = vld [vmem:[#allocation5 + $0x14] ss:$8 sps:$4 sm:$0xff]  }
  0x29   :  { %494 = vmatprep.subr.bf16.mxu0 %v642_v1  ;;  %452 = vmatpush1.bf16.msra.mxu1 %v644_v2  ;;  %v648_v5 = vld [vmem:[#allocation5 + $0x114] ss:$8 sps:$4 sm:$0xff]   ;;  %v650_v6 = vld [vmem:[#allocation5 + $0x10] ss:$8 sps:$4 sm:$0xff]   ;;  %v652_v8 = vld [vmem:[#allocation5 + $0x24] ss:$8 sps:$4 sm:$0xff]  }
  0x2a   :  { %495 = vmatpush1.bf16.msra.mxu0 %v645_v3  ;;  %453 = vmatprep.subr.bf16.mxu1 %v646_v4  ;;  %v651_v7 = vld [vmem:[#allocation5 + $0x110] ss:$8 sps:$4 sm:$0xff]   ;;  %v654_v9 = vld [vmem:[#allocation5 + $0x124] ss:$8 sps:$4 sm:$0xff]   ;;  %v656_v10 = vld [vmem:[#allocation5 + $0x20] ss:$8 sps:$4 sm:$0xff]  }
  0x2b   :  { %496 = vmatprep.subr.bf16.mxu0 %v648_v5  ;;  %v657_v11 = vld [vmem:[#allocation5 + $0x120] ss:$8 sps:$4 sm:$0xff]   ;;  %v658_v12 = vld [vmem:[#allocation5 + $0x34] ss:$8 sps:$4 sm:$0xff]   ;;  %v662_v14 = vld [vmem:[#allocation5 + $0x30] ss:$8 sps:$4 sm:$0xff]  }
  0x2c   :  { %v660_v13 = vld [vmem:[#allocation5 + $0x134] ss:$8 sps:$4 sm:$0xff]   ;;  %v663_v15 = vld [vmem:[#allocation5 + $0x130] ss:$8 sps:$4 sm:$0xff]   ;;  %v664_v16 = vld [vmem:[#allocation5 + $0x44] ss:$8 sps:$4 sm:$0xff]  }
  0x2d   :  { %454 = vmatpush1.bf16.msra.mxu1 %v650_v6  ;;  %v666_v17 = vld [vmem:[#allocation5 + $0x144] ss:$8 sps:$4 sm:$0xff]   ;;  %v668_v18 = vld [vmem:[#allocation5 + $0x40] ss:$8 sps:$4 sm:$0xff]   ;;  %v670_v20 = vld [vmem:[#allocation5 + $0x54] ss:$8 sps:$4 sm:$0xff]  }
  0x2e   :  { %497 = vmatpush1.bf16.msra.mxu0 %v651_v7  ;;  %455 = vmatprep.subr.bf16.mxu1 %v652_v8  ;;  %v669_v19 = vld [vmem:[#allocation5 + $0x140] ss:$8 sps:$4 sm:$0xff]   ;;  %v672_v21 = vld [vmem:[#allocation5 + $0x154] ss:$8 sps:$4 sm:$0xff]   ;;  %v674_v22 = vld [vmem:[#allocation5 + $0x50] ss:$8 sps:$4 sm:$0xff]  }
  0x2f   :  { %498 = vmatprep.subr.bf16.mxu0 %v654_v9  ;;  %v675_v23 = vld [vmem:[#allocation5 + $0x150] ss:$8 sps:$4 sm:$0xff]   ;;  %v676_v24 = vld [vmem:[#allocation5 + $0x64] ss:$8 sps:$4 sm:$0xff]   ;;  %v680_v26 = vld [vmem:[#allocation5 + $0x60] ss:$8 sps:$4 sm:$0xff]  }
  0x30   :  { %v678_v25 = vld [vmem:[#allocation5 + $0x164] ss:$8 sps:$4 sm:$0xff]   ;;  %v681_v27 = vld [vmem:[#allocation5 + $0x160] ss:$8 sps:$4 sm:$0xff]   ;;  %v682_v28 = vld [vmem:[#allocation5 + $0x74] ss:$8 sps:$4 sm:$0xff]  }
  0x31   :  { %456 = vmatpush1.bf16.msra.mxu1 %v656_v10  ;;  %v684_v29 = vld [vmem:[#allocation5 + $0x174] ss:$8 sps:$4 sm:$0xff]   ;;  %v686_v30 = vld [vmem:[#allocation5 + $0x70] ss:$8 sps:$4 sm:$0xff]   ;;  %v688_v32 = vld [vmem:[#allocation5 + $0x84] ss:$8 sps:$4 sm:$0xff]  }
  0x32   :  { %499 = vmatpush1.bf16.msra.mxu0 %v657_v11  ;;  %457 = vmatprep.subr.bf16.mxu1 %v658_v12  ;;  %v687_v31 = vld [vmem:[#allocation5 + $0x170] ss:$8 sps:$4 sm:$0xff]   ;;  %v690_v33 = vld [vmem:[#allocation5 + $0x184] ss:$8 sps:$4 sm:$0xff]   ;;  %v692_v34 = vld [vmem:[#allocation5 + $0x80] ss:$8 sps:$4 sm:$0xff]   ;;  %v121_v12 = vlaneseq }
  0x33   :  { %500 = vmatprep.subr.bf16.mxu0 %v660_v13  ;;  %v693_v35 = vld [vmem:[#allocation5 + $0x180] ss:$8 sps:$4 sm:$0xff]   ;;  %v694_v36 = vld [vmem:[#allocation5 + $0x94] ss:$8 sps:$4 sm:$0xff]   ;;  %v698_v38 = vld [vmem:[#allocation5 + $0x90] ss:$8 sps:$4 sm:$0xff]  }
  0x34   :  { %v696_v37 = vld [vmem:[#allocation5 + $0x194] ss:$8 sps:$4 sm:$0xff]   ;;  %v699_v39 = vld [vmem:[#allocation5 + $0x190] ss:$8 sps:$4 sm:$0xff]   ;;  %v700_v40 = vld [vmem:[#allocation5 + $0xa4] ss:$8 sps:$4 sm:$0xff]  }
  0x35   :  { %458 = vmatpush1.bf16.msra.mxu1 %v662_v14  ;;  %v702_v41 = vld [vmem:[#allocation5 + $0x1a4] ss:$8 sps:$4 sm:$0xff]   ;;  %v704_v42 = vld [vmem:[#allocation5 + $0xa0] ss:$8 sps:$4 sm:$0xff]   ;;  %v706_v44 = vld [vmem:[#allocation5 + $0xb4] ss:$8 sps:$4 sm:$0xff]  }
  0x36   :  { %501 = vmatpush1.bf16.msra.mxu0 %v663_v15  ;;  %459 = vmatprep.subr.bf16.mxu1 %v664_v16  ;;  %v705_v43 = vld [vmem:[#allocation5 + $0x1a0] ss:$8 sps:$4 sm:$0xff]   ;;  %v708_v45 = vld [vmem:[#allocation5 + $0x1b4] ss:$8 sps:$4 sm:$0xff]   ;;  %v710_v50 = vld [vmem:[#allocation5 + $0xb0] ss:$8 sps:$4 sm:$0xff]  }
  0x37   :  { %502 = vmatprep.subr.bf16.mxu0 %v666_v17  ;;  %v44_v46 = vld [vmem:[#allocation2 + $0x8] sm:$0xff]  ;;  %v46_v48 = vld [vmem:[#allocation2 + $0x18] sm:$0xff]  ;;  %v43_v6 = vld [vmem:[#allocation2] sm:$0xff]  ;;  %v122_v13 = vshrl.u32 %v121_v12, 7  ;;  %s814_s13 = smov [#allocation7]  }
  0x38   :  { %v48_v47 = vld [vmem:[#allocation2 + $0x28] sm:$0xff]  ;;  %v50_v49 = vld [vmem:[#allocation2 + $0x38] sm:$0xff]  ;;  %v47_v7 = vld [vmem:[#allocation2 + $0x20] sm:$0xff]  ;;  %s546_s14 = sshll.u32 %s814_s13, 4  ;;  %s547_s14 = int_to_ptr.vmem [resolvable:$true] %s546_s14 }
  0x39   :  { %460 = vmatpush1.bf16.msra.mxu1 %v668_v18  ;;  %v711_v51 = vld [vmem:[#allocation5 + $0x1b0] ss:$8 sps:$4 sm:$0xff]   ;;  %v52_v52 = vpack.c.bf16 %v48_v47, %v44_v46  ;;  %v54_v53 = vpack.c.bf16 %v50_v49, %v46_v48  ;;  %v712_v54 = vld [vmem:[#allocation5 + $0xc4] ss:$8 sps:$4 sm:$0xff]   ;;  %v716_v56 = vld [vmem:[#allocation5 + $0xc0] ss:$8 sps:$4 sm:$0xff]   ;;  %v51_v10 = vpack.c.bf16 %v47_v7, %v43_v6  ;;  %p785_p3 = scmp.lt.s32.totalorder %s547_s14, %s547_s14 }
  0x3a   :  { %503 = vmatpush1.bf16.msra.mxu0 %v669_v19  ;;  %461 = vmatprep.subr.bf16.mxu1 %v670_v20  ;;  %v714_v55 = vld [vmem:[#allocation5 + $0x1c4] ss:$8 sps:$4 sm:$0xff]   ;;  %v717_v57 = vld [vmem:[#allocation5 + $0x1c0] ss:$8 sps:$4 sm:$0xff]   ;;  %v718_v58 = vld [vmem:[#allocation5 + $0xd4] ss:$8 sps:$4 sm:$0xff]  }
  0x3b   :  { %504 = vmatprep.subr.bf16.mxu0 %v672_v21  ;;  %483 = vmatprep.mubr.bf16.mxu1 %v52_v52  ;;  %v720_v59 = vld [vmem:[#allocation5 + $0x1d4] ss:$8 sps:$4 sm:$0xff]   ;;  %v722_v60 = vld [vmem:[#allocation5 + $0xd0] ss:$8 sps:$4 sm:$0xff]   ;;  %v724_v62 = vld [vmem:[#allocation5 + $0xe4] ss:$8 sps:$4 sm:$0xff]  }
  0x3c   :  { %526 = vmatprep.mubr.bf16.mxu0 %v54_v53  ;;  %v723_v61 = vld [vmem:[#allocation5 + $0x1d0] ss:$8 sps:$4 sm:$0xff]   ;;  %v726_v63 = vld [vmem:[#allocation5 + $0x1e4] ss:$8 sps:$4 sm:$0xff]   ;;  %v728_v0 = vld [vmem:[#allocation5 + $0xe0] ss:$8 sps:$4 sm:$0xff]  }
  0x3d   :  { %462 = vmatpush1.bf16.msra.mxu1 %v674_v22  ;;  %v729_v1 = vld [vmem:[#allocation5 + $0x1e0] ss:$8 sps:$4 sm:$0xff]   ;;  %v730_v2 = vld [vmem:[#allocation5 + $0xf4] ss:$8 sps:$4 sm:$0xff]   ;;  %v734_v4 = vld [vmem:[#allocation5 + $0xf0] ss:$8 sps:$4 sm:$0xff]  }
  0x3e   :  { %505 = vmatpush1.bf16.msra.mxu0 %v675_v23  ;;  %463 = vmatprep.subr.bf16.mxu1 %v676_v24  ;;  %v732_v3 = vld [vmem:[#allocation5 + $0x1f4] ss:$8 sps:$4 sm:$0xff]   ;;  %v735_v5 = vld [vmem:[#allocation5 + $0x1f0] ss:$8 sps:$4 sm:$0xff]   ;;  %v123_v14 = vsub.s32 0, %v122_v13  ;;  %v127_v16 = vsub.s32 1, %v122_v13 }
  0x3f   :  { %506 = vmatprep.subr.bf16.mxu0 %v678_v25  ;;  %v45_v8 = vld [vmem:[#allocation2 + $0x10] sm:$0xff]  ;;  %v119_v15 = vld [vmem:[%s878_s2] sm:$0x3]  ;;  %s780_s2 = scalar_lea.vmem %s547_s14, 512 }
  0x40   :  { %v49_v9 = vld [vmem:[#allocation2 + $0x30] sm:$0xff]  ;;  %v124_v17 = vrot.slane %v119_v15, %v123_v14  ;;  %v128_v18 = vrot.slane %v119_v15, %v127_v16  ;;  %p781_p2 = scmp.ne.s32.totalorder %s547_s14, %s780_s2  ;;  %p786_p4 = scmp.lt.s32.totalorder %s780_s2, %s780_s2 }
  0x41   :  { %464 = vmatpush1.bf16.msra.mxu1 %v680_v26  ;;  %v53_v11 = vpack.c.bf16 %v49_v9, %v45_v8 }
  0x42   :  { %507 = vmatpush1.bf16.msra.mxu0 %v681_v27  ;;  %465 = vmatprep.subr.bf16.mxu1 %v682_v28  ;;  %p787_p5 = por %p786_p4, %p785_p3 }
  0x43   :  { %508 = vmatprep.subr.bf16.mxu0 %v684_v29 }
  0x44   :  { %p788_p6 = pnand %p787_p5, %p781_p2 }
  0x45   :  { %466 = vmatpush1.bf16.msra.mxu1 %v686_v30 }
  0x46   :  { %509 = vmatpush1.bf16.msra.mxu0 %v687_v31  ;;  %467 = vmatprep.subr.bf16.mxu1 %v688_v32 }
  0x47   :  { %510 = vmatprep.subr.bf16.mxu0 %v690_v33 }
  0x49   :  { %468 = vmatpush1.bf16.msra.mxu1 %v692_v34 }
  0x4a   :  { %511 = vmatpush1.bf16.msra.mxu0 %v693_v35  ;;  %469 = vmatprep.subr.bf16.mxu1 %v694_v36 }
  0x4b   :  { %512 = vmatprep.subr.bf16.mxu0 %v696_v37 }
  0x4d   :  { %470 = vmatpush1.bf16.msra.mxu1 %v698_v38 }
  0x4e   :  { %513 = vmatpush1.bf16.msra.mxu0 %v699_v39  ;;  %471 = vmatprep.subr.bf16.mxu1 %v700_v40 }
  0x4f   :  { %514 = vmatprep.subr.bf16.mxu0 %v702_v41 }
  0x51   :  { %472 = vmatpush1.bf16.msra.mxu1 %v704_v42 }
  0x52   :  { %515 = vmatpush1.bf16.msra.mxu0 %v705_v43  ;;  %473 = vmatprep.subr.bf16.mxu1 %v706_v44 }
  0x53   :  { %516 = vmatprep.subr.bf16.mxu0 %v708_v45 }
  0x55   :  { %474 = vmatpush1.bf16.msra.mxu1 %v710_v50 }
  0x56   :  { %517 = vmatpush1.bf16.msra.mxu0 %v711_v51  ;;  %475 = vmatprep.subr.bf16.mxu1 %v712_v54 }
  0x57   :  { %518 = vmatprep.subr.bf16.mxu0 %v714_v55 }
  0x59   :  { %476 = vmatpush1.bf16.msra.mxu1 %v716_v56 }
  0x5a   :  { %519 = vmatpush1.bf16.msra.mxu0 %v717_v57  ;;  %477 = vmatprep.subr.bf16.mxu1 %v718_v58 }
  0x5b   :  { %520 = vmatprep.subr.bf16.mxu0 %v720_v59 }
  0x5d   :  { %478 = vmatpush1.bf16.msra.mxu1 %v722_v60 }
  0x5e   :  { %521 = vmatpush1.bf16.msra.mxu0 %v723_v61  ;;  %479 = vmatprep.subr.bf16.mxu1 %v724_v62 }
  0x5f   :  { %522 = vmatprep.subr.bf16.mxu0 %v726_v63 }
  0x61   :  { %480 = vmatpush1.bf16.msra.mxu1 %v728_v0 }
  0x62   :  { %523 = vmatpush1.bf16.msra.mxu0 %v729_v1  ;;  %481 = vmatprep.subr.bf16.mxu1 %v730_v2 }
  0x63   :  { %524 = vmatprep.subr.bf16.mxu0 %v732_v3 }
  0x65   :  { %482 = vmatpush1.bf16.msra.mxu1 %v734_v4 }
  0x66   :  { %525 = vmatpush1.bf16.msra.mxu0 %v735_v5 }
  0x68   :  { %484 = vmatmul.mubr.bf16.vlgmr.msra.gmra.mrb[0].mxu1 %v51_v10 }
  0x69   :  { %527 = vmatmul.mubr.bf16.vlgmr.msra.gmra.mrb[0].mxu0 %v53_v11 }
 0x13b   :  { %v485_v19 = vpop.f32.mrb[0].mxu1 }
 0x13c   :  { %v528_v20 = vpop.f32.mrb[0].mxu0  ;;  %v486_v21 = vadd.f32 %v485_v19, %v124_v17  ;;  %v487_v22 = vpop.f32.mrb[1].mxu1 }
 0x13d   :  { %v530_v23 = vpop.f32.mrb[1].mxu0  ;;  %v488_v24 = vadd.f32 %v487_v22, %v128_v18  ;;  %v489_v25 = vpop.f32.mrb[2].mxu1 }
 0x13e   :  { %v532_v26 = vpop.f32.mrb[2].mxu0  ;;  %v529_v27 = vadd.f32 %v528_v20, %v486_v21  ;;  %v490_v28 = vadd.f32 %v489_v25, %v124_v17  ;;  %v491_v29 = vpop.f32.mrb[3].mxu1 }
 0x13f   :  { %v534_v30 = vpop.f32.mrb[3].mxu0  ;;  %v531_v31 = vadd.f32 %v530_v23, %v488_v24  ;;  %v492_v32 = vadd.f32 %v491_v29, %v128_v18 }
 0x140   :  { %537 = vst [vmem:[#allocation7] sm:$0xff] %v529_v27  ;;  %v533_v33 = vadd.f32 %v532_v26, %v490_v28 }
 0x141   :  { %538 = vst [vmem:[#allocation7 + $0x8] sm:$0xff] %v531_v31  ;;  %v535_v34 = vadd.f32 %v534_v30, %v492_v32 }
 0x142   :  { %539 = vst [vmem:[#allocation7 + $0x10] sm:$0xff] %v533_v33 }
 0x143   :  { %540 = vst [vmem:[#allocation7 + $0x18] sm:$0xff] %v535_v34 }
 0x144   :  { %791 = shalt.err (!%p788_p6)
}
 0x145   :  { %s792_s17 = scalar_lea.hbm %s879_s3, 512 }
 0x146   :  { %p793_p7 = scmp.ne.s32.totalorder %s879_s3, %s792_s17  ;;  %p796_p8 = scmp.lt.u32.totalorder %s792_s17, %s879_s3 }
 0x148   :  { %p798_p9 = pnand %p796_p8, %p793_p7 }
 0x14a   :  { %801 = shalt.err (!%p798_p9)
}
 0x14b   :  { %s815_s22 = smov 256   ;;  %s816_s23 = smov 16  }
 0x14c   :  { %552 = dma.vmem_to_hbm [thread:$0]  %s547_s14, 512, %s879_s3, [#allocation4], %s815_s22, %s815_s22, %s816_s23  }
 0x14d   :  { %806 = dma.done.wait [#allocation4], 512  }
 0x14e   :  { %807 = vsyncadd [#allocation4], 4294966784 }
 0x14f   :  { %556 = vsyncpa [#allocation3], 1 }
 0x150   :  { %557 = vsyncpa [#allocation6], 1 }
 0x151   :  { %558 = vsyncpa [#allocation4], 1 }

</bundles_post_ra>
